<compile_context>
chip_gen: v5e
topology: v5e:2x2
jax: 0.10.0
libtpu: 0.0.40
codegen_flags: <defaults>
</compile_context>

<pallas_src>
import jax
import jax.numpy as jnp
from jax.experimental import pallas as pl
from jax.experimental.pallas import tpu as pltpu

BN_EPS = 1e-5


def velodrome_kernel(
    x_ref,    # [TM, IE]   f32 activations (cast to bf16 for the MXU inside)
    w1_ref,   # [IE, 512]  bf16, BN folded in
    b1_ref,   # [1, 512]   f32, BN folded in
    w2_ref,   # [512, 128] bf16
    b2_ref,   # [1, 128]   f32
    wp_ref,   # [128, 1]   f32, both heads + ensemble mix folded in
    bp_ref,   # [1, 1]     f32
    out_ref,  # [TM, 1]    f32
):
    # Linear(IE -> 512) with BatchNorm(eval) pre-folded. bf16 MXU operands, f32 accum.
    x = x_ref[...].astype(jnp.bfloat16)
    h = jnp.dot(x, w1_ref[...], preferred_element_type=jnp.float32) + b1_ref[...]

    # ReLU (Dropout is identity in eval). Elementwise stays f32 (v5e has no bf16 VPU).
    h = jnp.maximum(h, 0.0)

    # Linear(512 -> 128) + Sigmoid.
    f = jnp.dot(h.astype(jnp.bfloat16), w2_ref[...],
                preferred_element_type=jnp.float32) + b2_ref[...]
    f = jax.nn.sigmoid(f)

    # Fused prediction heads + ensemble weighting: one [128,1] matmul.
    out_ref[...] = jnp.dot(f, wp_ref[...], preferred_element_type=jnp.float32) + bp_ref[...]


def velodrome_forward(x, params, w_losses_1, w_losses_2, *, tm=256):
    """Host-side folding + single fused pallas_call with a batch-parallel grid."""
    n, ie_dim = x.shape
    f32 = jnp.float32

    # Ensemble weights: softmax([mean(w1_losses), mean(w2_losses)]).
    ws = jnp.stack([jnp.mean(w_losses_1), jnp.mean(w_losses_2)])
    wmix = jax.nn.softmax(ws).astype(f32)

    # Fold BatchNorm1d (eval mode, running stats) into Linear(IE->512).
    s = params["gamma"] * jax.lax.rsqrt(params["rvar"] + BN_EPS)          # [1, 512]
    w1_f = (params["w1"] * s).astype(jnp.bfloat16)                         # [IE, 512]
    b1_f = ((params["b1"] - params["rmean"]) * s + params["beta"]).astype(f32)

    w2_b = params["w2"].astype(jnp.bfloat16)                               # [512, 128]
    b2 = params["b2"].astype(f32)

    # Fold both heads + ensemble softmax weights into one head.
    wp = (wmix[0] * params["wp1"] + wmix[1] * params["wp2"]).astype(f32)   # [128, 1]
    bp = (wmix[0] * params["bp1"] + wmix[1] * params["bp2"]).astype(f32)   # [1, 1]

    # Batch tiling: TM capped at 256 (fills the v6e/v7x 256-wide MXU rows),
    # rounded so block rows are sublane-aligned (multiple of 8).
    tm_eff = min(tm, ((n + 7) // 8) * 8)
    n_pad = ((n + tm_eff - 1) // tm_eff) * tm_eff
    x_p = x.astype(f32)
    if n_pad != n:
        x_p = jnp.pad(x_p, ((0, n_pad - n), (0, 0)))
    grid = (n_pad // tm_eff,)

    const2 = lambda i: (0, 0)   # weights stay VMEM-resident across batch tiles
    in_specs = [
        pl.BlockSpec((tm_eff, ie_dim), lambda i: (i, 0)),
        pl.BlockSpec(w1_f.shape, const2),
        pl.BlockSpec(b1_f.shape, const2),
        pl.BlockSpec(w2_b.shape, const2),
        pl.BlockSpec(b2.shape, const2),
        pl.BlockSpec(wp.shape, const2),
        pl.BlockSpec(bp.shape, const2),
    ]
    # Output last dim is 1 (matches module semantics) -> masked stores; negligible
    # here since the store volume is 4 bytes/row.
    out_spec = pl.BlockSpec((tm_eff, 1), lambda i: (i, 0))

    flops = 2 * n_pad * (ie_dim * 512 + 512 * 128 + 128)
    bytes_accessed = (
        w1_f.size * 2 + w2_b.size * 2
        + (b1_f.size + b2.size + wp.size + bp.size) * 4
        + x_p.size * 4 + n_pad * 4
    )
    cost = pl.CostEstimate(
        flops=flops, transcendentals=n_pad * 128, bytes_accessed=bytes_accessed
    )

    out = pl.pallas_call(
        velodrome_kernel,
        out_shape=jax.ShapeDtypeStruct((n_pad, 1), f32),
        grid=grid,
        in_specs=in_specs,
        out_specs=out_spec,
        compiler_params=pltpu.CompilerParams(dimension_semantics=("parallel",)),
        cost_estimate=cost,
    )(x_p, w1_f, b1_f, w2_b, b2, wp, bp)

    return out[:n]


def init_params(key, ie_dim):
    """Deterministic synthetic init matching Net1 (hd=1) + the two Pred heads."""
    ks = jax.random.split(key, 12)

    def lin(kw, kb, fan_in, fan_out):
        bound = 1.0 / jnp.sqrt(jnp.float32(fan_in))
        w = jax.random.uniform(kw, (fan_in, fan_out), jnp.float32, -bound, bound)
        b = jax.random.uniform(kb, (1, fan_out), jnp.float32, -bound, bound)
        return w, b

    w1, b1 = lin(ks[0], ks[1], ie_dim, 512)
    w2, b2 = lin(ks[2], ks[3], 512, 128)
    wp1, bp1 = lin(ks[4], ks[5], 128, 1)
    wp2, bp2 = lin(ks[6], ks[7], 128, 1)

    gamma = 1.0 + 0.1 * jax.random.normal(ks[8], (1, 512), jnp.float32)
    beta = 0.1 * jax.random.normal(ks[9], (1, 512), jnp.float32)
    rmean = 0.05 * jax.random.normal(ks[10], (1, 512), jnp.float32)
    rvar = 1.0 + 0.1 * jax.random.uniform(ks[11], (1, 512), jnp.float32)

    return dict(
        w1=w1, b1=b1, gamma=gamma, beta=beta, rmean=rmean, rvar=rvar,
        w2=w2, b2=b2, wp1=wp1, bp1=bp1, wp2=wp2, bp2=bp2,
    )


def reference_forward(x, params, w_losses_1, w_losses_2):
    """Pure-JAX f32 reference (unfolded) for correctness checking."""
    ws = jnp.stack([jnp.mean(w_losses_1), jnp.mean(w_losses_2)])
    wn = jax.nn.softmax(ws)
    h = x @ params["w1"] + params["b1"]
    h = (h - params["rmean"]) / jnp.sqrt(params["rvar"] + BN_EPS) * params["gamma"] + params["beta"]
    h = jnp.maximum(h, 0.0)
    f = jax.nn.sigmoid(h @ params["w2"] + params["b2"])
    p1 = f @ params["wp1"] + params["bp1"]
    p2 = f @ params["wp2"] + params["bp2"]
    return wn[0] * p1 + wn[1] * p2


if __name__ == "__main__":
    key = jax.random.PRNGKey(0)
    k_x, k_p, k_w1, k_w2 = jax.random.split(key, 4)

    N = 64        # batch (args.bs = 64 in the reference)
    IE_DIM = 128  # small synthetic mutation-feature dim

    x = jax.random.normal(k_x, (N, IE_DIM), jnp.float32)
    params = init_params(k_p, IE_DIM)

    # Synthetic training-loss histories used for the ensemble softmax weights.
    w_losses_1 = jax.random.uniform(k_w1, (30,), jnp.float32, 0.1, 1.0)
    w_losses_2 = jax.random.uniform(k_w2, (30,), jnp.float32, 0.1, 1.0)

    out = velodrome_forward(x, params, w_losses_1, w_losses_2)
    out = jax.block_until_ready(out)

    ref = reference_forward(x, params, w_losses_1, w_losses_2)
    assert out.shape == (N, 1), out.shape
    # bf16 weights -> relaxed tolerance vs the f32 reference.
    assert jnp.allclose(out, ref, atol=1e-2, rtol=1e-2), (
        float(jnp.max(jnp.abs(out - ref))), out[:4], ref[:4]
    )

    print("KERNEL_OK")
</pallas_src>

<mosaic_0001>
module attributes {stable_mosaic.version = 11 : i64} {
  func.func @velodrome_kernel(%arg0: i32, %arg1: memref<64x128xf32, #tpu.memory_space<vmem>>, %arg2: memref<128x512xbf16, #tpu.memory_space<vmem>>, %arg3: memref<1x512xf32, #tpu.memory_space<vmem>>, %arg4: memref<512x128xbf16, #tpu.memory_space<vmem>>, %arg5: memref<1x128xf32, #tpu.memory_space<vmem>>, %arg6: memref<128x1xf32, #tpu.memory_space<vmem>>, %arg7: memref<1x1xf32, #tpu.memory_space<vmem>>, %arg8: memref<64x1xf32, #tpu.memory_space<vmem>>) attributes {dimension_semantics = [#tpu.dimension_semantics<parallel>], iteration_bounds = array<i64: 1>, scalar_prefetch = 0 : i64, scratch_operands = 0 : i64, tpu.core_type = #tpu.core_type<tc>, window_params = [{transform_indices = @transform_0, window_bounds = array<i64: 64, 128>}, {pipeline_mode = #tpu.pipeline_mode<synchronous>, transform_indices = @transform_1, window_bounds = array<i64: 128, 512>}, {pipeline_mode = #tpu.pipeline_mode<synchronous>, transform_indices = @transform_2, window_bounds = array<i64: 1, 512>}, {pipeline_mode = #tpu.pipeline_mode<synchronous>, transform_indices = @transform_3, window_bounds = array<i64: 512, 128>}, {pipeline_mode = #tpu.pipeline_mode<synchronous>, transform_indices = @transform_4, window_bounds = array<i64: 1, 128>}, {pipeline_mode = #tpu.pipeline_mode<synchronous>, transform_indices = @transform_5, window_bounds = array<i64: 128, 1>}, {pipeline_mode = #tpu.pipeline_mode<synchronous>, transform_indices = @transform_6, window_bounds = array<i64: 1, 1>}, {transform_indices = @transform_7, window_bounds = array<i64: 64, 1>}]} {
    %c0 = arith.constant 0 : index
    %c0_0 = arith.constant 0 : index
    %0 = vector.load %arg1[%c0, %c0_0] : memref<64x128xf32, #tpu.memory_space<vmem>>, vector<64x128xf32>
    %1 = arith.truncf %0 : vector<64x128xf32> to vector<64x128xbf16>
    %c0_1 = arith.constant 0 : index
    %c0_2 = arith.constant 0 : index
    %2 = vector.load %arg2[%c0_1, %c0_2] : memref<128x512xbf16, #tpu.memory_space<vmem>>, vector<128x512xbf16>
    %cst = arith.constant dense<0.000000e+00> : vector<64x512xf32>
    %3 = tpu.matmul %1, %2, %cst {dimension_numbers = #tpu.dot_dimension_numbers<[1], [0], [0], [1], [0, 0, 1, 1], [], []>} : vector<64x128xbf16>, vector<128x512xbf16>, vector<64x512xf32> -> vector<64x512xf32>
    %c0_3 = arith.constant 0 : index
    %c0_4 = arith.constant 0 : index
    %4 = vector.load %arg3[%c0_3, %c0_4] : memref<1x512xf32, #tpu.memory_space<vmem>>, vector<1x512xf32>
    %5 = vector.broadcast %4 : vector<1x512xf32> to vector<64x512xf32>
    %6 = arith.addf %3, %5 : vector<64x512xf32>
    %cst_5 = arith.constant 0.000000e+00 : f32
    %7 = vector.broadcast %cst_5 : f32 to vector<64x512xf32>
    %8 = arith.maximumf %6, %7 : vector<64x512xf32>
    %9 = arith.truncf %8 : vector<64x512xf32> to vector<64x512xbf16>
    %c0_6 = arith.constant 0 : index
    %c0_7 = arith.constant 0 : index
    %10 = vector.load %arg4[%c0_6, %c0_7] : memref<512x128xbf16, #tpu.memory_space<vmem>>, vector<512x128xbf16>
    %cst_8 = arith.constant dense<0.000000e+00> : vector<64x128xf32>
    %11 = tpu.matmul %9, %10, %cst_8 {dimension_numbers = #tpu.dot_dimension_numbers<[1], [0], [0], [1], [0, 0, 1, 1], [], []>} : vector<64x512xbf16>, vector<512x128xbf16>, vector<64x128xf32> -> vector<64x128xf32>
    %c0_9 = arith.constant 0 : index
    %c0_10 = arith.constant 0 : index
    %12 = vector.load %arg5[%c0_9, %c0_10] : memref<1x128xf32, #tpu.memory_space<vmem>>, vector<1x128xf32>
    %13 = vector.broadcast %12 : vector<1x128xf32> to vector<64x128xf32>
    %14 = arith.addf %11, %13 : vector<64x128xf32>
    %15 = arith.negf %14 : vector<64x128xf32>
    %16 = math.exp %15 : vector<64x128xf32>
    %cst_11 = arith.constant 1.000000e+00 : f32
    %17 = vector.broadcast %cst_11 : f32 to vector<64x128xf32>
    %18 = arith.addf %17, %16 : vector<64x128xf32>
    %19 = arith.divf %17, %18 : vector<64x128xf32>
    %c0_12 = arith.constant 0 : index
    %c0_13 = arith.constant 0 : index
    %20 = vector.load %arg6[%c0_12, %c0_13] : memref<128x1xf32, #tpu.memory_space<vmem>>, vector<128x1xf32>
    %cst_14 = arith.constant dense<0.000000e+00> : vector<64x1xf32>
    %21 = tpu.matmul %19, %20, %cst_14 {dimension_numbers = #tpu.dot_dimension_numbers<[1], [0], [0], [1], [0, 0, 1, 1], [], []>} : vector<64x128xf32>, vector<128x1xf32>, vector<64x1xf32> -> vector<64x1xf32>
    %c0_15 = arith.constant 0 : index
    %c0_16 = arith.constant 0 : index
    %22 = vector.load %arg7[%c0_15, %c0_16] : memref<1x1xf32, #tpu.memory_space<vmem>>, vector<1x1xf32>
    %23 = vector.broadcast %22 : vector<1x1xf32> to vector<64x1xf32>
    %24 = arith.addf %21, %23 : vector<64x1xf32>
    %c0_17 = arith.constant 0 : index
    %c0_18 = arith.constant 0 : index
    %25 = vector.load %arg8[%c0_17, %c0_18] : memref<64x1xf32, #tpu.memory_space<vmem>>, vector<64x1xf32>
    tpu.vector_store %arg8[%c0_17, %c0_18], %24 {strides = array<i32>} : memref<64x1xf32, #tpu.memory_space<vmem>>, vector<64x1xf32>,
    return
  }
  func.func @transform_0(%arg0: i32) -> (i32, i32) {
    %c0_i32 = arith.constant 0 : i32
    %c0_i32_0 = arith.constant 0 : i32
    return %arg0, %c0_i32 : i32, i32
  }
  func.func @transform_1(%arg0: i32) -> (i32, i32) {
    %c0_i32 = arith.constant 0 : i32
    %c0_i32_0 = arith.constant 0 : i32
    %c0_i32_1 = arith.constant 0 : i32
    return %c0_i32, %c0_i32_0 : i32, i32
  }
  func.func @transform_2(%arg0: i32) -> (i32, i32) {
    %c0_i32 = arith.constant 0 : i32
    %c0_i32_0 = arith.constant 0 : i32
    %c0_i32_1 = arith.constant 0 : i32
    return %c0_i32, %c0_i32_0 : i32, i32
  }
  func.func @transform_3(%arg0: i32) -> (i32, i32) {
    %c0_i32 = arith.constant 0 : i32
    %c0_i32_0 = arith.constant 0 : i32
    %c0_i32_1 = arith.constant 0 : i32
    return %c0_i32, %c0_i32_0 : i32, i32
  }
  func.func @transform_4(%arg0: i32) -> (i32, i32) {
    %c0_i32 = arith.constant 0 : i32
    %c0_i32_0 = arith.constant 0 : i32
    %c0_i32_1 = arith.constant 0 : i32
    return %c0_i32, %c0_i32_0 : i32, i32
  }
  func.func @transform_5(%arg0: i32) -> (i32, i32) {
    %c0_i32 = arith.constant 0 : i32
    %c0_i32_0 = arith.constant 0 : i32
    %c0_i32_1 = arith.constant 0 : i32
    return %c0_i32, %c0_i32_0 : i32, i32
  }
  func.func @transform_6(%arg0: i32) -> (i32, i32) {
    %c0_i32 = arith.constant 0 : i32
    %c0_i32_0 = arith.constant 0 : i32
    %c0_i32_1 = arith.constant 0 : i32
    return %c0_i32, %c0_i32_0 : i32, i32
  }
  func.func @transform_7(%arg0: i32) -> (i32, i32) {
    %c0_i32 = arith.constant 0 : i32
    %c0_i32_0 = arith.constant 0 : i32
    return %arg0, %c0_i32 : i32, i32
  }
}

</mosaic_0001>

<bundles_post_ra>
// kernel: tpu_custom_call.1
= control target key start
LH: loop header
LB: loop body
LE: loop exit
PB: predicated region body
PF: predicated region fallthrough
CT: control target
= control target key end

     0   :  { %s1710_s0 = inlined_call_operand.vmem [shape: f32[64,128], index: 0, kind: input, shape index: {}]   ;;  %s1711_s1 = inlined_call_operand.hbm [shape: bf16[128,512], index: 1, kind: input, shape index: {}]   ;;  %s1712_s2 = inlined_call_operand.vmem [shape: f32[1,512], index: 2, kind: input, shape index: {}]   ;;  %s1713_s3 = inlined_call_operand.hbm [shape: bf16[512,128], index: 3, kind: input, shape index: {}]   ;;  %s1714_s4 = inlined_call_operand.vmem [shape: f32[1,128], index: 4, kind: input, shape index: {}]   ;;  %s1715_s5 = inlined_call_operand.vmem [shape: f32[128,1], index: 5, kind: input, shape index: {}]   ;;  %s1716_s6 = inlined_call_operand.<no memory space> [shape: f32[1,1], index: 6, kind: input, shape index: {}]   ;;  %s1717_s7 = inlined_call_operand.vmem [shape: f32[64,1], index: 7, kind: output, shape index: {}]  }
   0x1   :  { %v12_v0 = vstv %s1716_s6 }
   0x2   :  { %13 = vst [vmem:[#allocation2] sm:$0x1] %v12_v0 }
   0x3   :  { %14 = vsyncpa [#allocation4], 0  ;;  %s22_s28 = sshll.u32 %s1711_s1, 4  ;;  %s23_s28 = int_to_ptr.hbm [resolvable:$true] %s22_s28 }
   0x4   :  { %15 = vsyncpa [#allocation6], 0  ;;  %s1486_s29 = smov [#allocation3]   ;;  %s37_s10 = sshll.u32 %s1713_s3, 4  ;;  %s38_s10 = int_to_ptr.hbm [resolvable:$true] %s37_s10 }
   0x5   :  { %s24_s30 = sshll.u32 %s1486_s29, 4  ;;  %s1487_s11 = smov 256   ;;  %s25_s30 = int_to_ptr.vmem [resolvable:$true] %s24_s30 }
   0x6   :  { %s1488_s12 = smov 16   ;;  %s1489_s6 = smov [#allocation5]  }
   0x7   :  { %30 = dma.hbm_to_vmem [thread:$0]  %s23_s28, 4096, %s25_s30, [#allocation4], %s1487_s11, %s1487_s11, %s1488_s12  }
   0x8   :  { %s39_s13 = sshll.u32 %s1489_s6, 4  ;;  %s1490_s14 = smov 64   ;;  %s40_s13 = int_to_ptr.vmem [resolvable:$true] %s39_s13 }
   0x9   :  { %s1491_s15 = smov 4  }
   0xa   :  { %45 = dma.hbm_to_vmem [thread:$0]  %s38_s10, 4096, %s40_s13, [#allocation6], %s1490_s14, %s1490_s14, %s1491_s15  }
   0xb   :  { %1482 = dma.done.wait [#allocation4], 4096  }
   0xc   :  { %1483 = vsyncadd [#allocation4], 4294963200 }
   0xd   :  { %1484 = dma.done.wait [#allocation6], 4096  }
   0xe   :  { %1485 = vsyncadd [#allocation6], 4294963200  ;;  %v1156_v1 = vld [vmem:[#allocation3 + $0xe0] sm:$0xf]  ;;  %v1336_v2 = vld [vmem:[#allocation3 + $0xec] sm:$0xf0] }
   0xf   :  { %v1140_v3 = vld [vmem:[#allocation3 + $0xc0] sm:$0xf]  ;;  %v1157_v4 = vor.u32 %v1336_v2, %v1156_v1  ;;  %v1332_v5 = vld [vmem:[#allocation3 + $0xcc] sm:$0xf0]  ;;  %v1164_v6 = vld [vmem:[#allocation3 + $0xe8] sm:$0xf] }
  0x10   :  { %v1337_v7 = vld [vmem:[#allocation3 + $0xf4] sm:$0xf0]  ;;  %v1335_v9 = vld [vmem:[#allocation3 + $0xec] sm:$0xf]  ;;  %v1141_v10 = vor.u32 %v1332_v5, %v1140_v3  ;;  %v1166_v11 = vld [vmem:[#allocation3 + $0xf8] sm:$0xf0] }
  0x11   :  { %v1165_v8 = vor.u32 %v1337_v7, %v1164_v6  ;;  %274 = vmatpush.bf16.msra.mxu0 %v1157_v4  ;;  %1370 = vmatpush.bf16.msra.mxu1 %v1157_v4  ;;  %v1148_v12 = vld [vmem:[#allocation3 + $0xc8] sm:$0xf]  ;;  %v1333_v13 = vld [vmem:[#allocation3 + $0xd4] sm:$0xf0]  ;;  %v1124_v14 = vld [vmem:[#allocation3 + $0xa0] sm:$0xf]  ;;  %v1169_v16 = vor.u32 %v1335_v9, %v1166_v11 }
  0x12   :  { %v1328_v15 = vld [vmem:[#allocation3 + $0xac] sm:$0xf0]  ;;  %v1149_v17 = vor.u32 %v1333_v13, %v1148_v12  ;;  %v1331_v18 = vld [vmem:[#allocation3 + $0xcc] sm:$0xf]  ;;  %v1150_v19 = vld [vmem:[#allocation3 + $0xd8] sm:$0xf0] }
  0x13   :  { %332 = vmatpush.bf16.msra.mxu2 %v1165_v8  ;;  %v1132_v20 = vld [vmem:[#allocation3 + $0xa8] sm:$0xf]  ;;  %v1329_v21 = vld [vmem:[#allocation3 + $0xb4] sm:$0xf0]  ;;  %361 = vmatpush.bf16.msra.mxu3 %v1169_v16  ;;  %v1153_v22 = vor.u32 %v1331_v18, %v1150_v19  ;;  %v1125_v23 = vor.u32 %v1328_v15, %v1124_v14  ;;  %v1327_v24 = vld [vmem:[#allocation3 + $0xac] sm:$0xf] }
  0x14   :  { %v1134_v25 = vld [vmem:[#allocation3 + $0xb8] sm:$0xf0]  ;;  %v1108_v26 = vld [vmem:[#allocation3 + $0x80] sm:$0xf]  ;;  %v1324_v27 = vld [vmem:[#allocation3 + $0x8c] sm:$0xf0]  ;;  %v1133_v28 = vor.u32 %v1329_v21, %v1132_v20 }
  0x15   :  { %275 = vmatpush.bf16.msra.mxu0 %v1141_v10  ;;  %1371 = vmatpush.bf16.msra.mxu1 %v1141_v10  ;;  %v1116_v29 = vld [vmem:[#allocation3 + $0x88] sm:$0xf]  ;;  %v1325_v30 = vld [vmem:[#allocation3 + $0x94] sm:$0xf0]  ;;  %v1137_v31 = vor.u32 %v1327_v24, %v1134_v25  ;;  %v1109_v32 = vor.u32 %v1324_v27, %v1108_v26  ;;  %v1323_v33 = vld [vmem:[#allocation3 + $0x8c] sm:$0xf] }
  0x16   :  { %v1118_v34 = vld [vmem:[#allocation3 + $0x98] sm:$0xf0]  ;;  %v1092_v35 = vld [vmem:[#allocation3 + $0x60] sm:$0xf]  ;;  %v1320_v36 = vld [vmem:[#allocation3 + $0x6c] sm:$0xf0]  ;;  %v1117_v37 = vor.u32 %v1325_v30, %v1116_v29 }
  0x17   :  { %333 = vmatpush.bf16.msra.mxu2 %v1149_v17  ;;  %362 = vmatpush.bf16.msra.mxu3 %v1153_v22  ;;  %v1100_v38 = vld [vmem:[#allocation3 + $0x68] sm:$0xf]  ;;  %v1321_v39 = vld [vmem:[#allocation3 + $0x74] sm:$0xf0]  ;;  %v1121_v40 = vor.u32 %v1323_v33, %v1118_v34  ;;  %v1093_v41 = vor.u32 %v1320_v36, %v1092_v35  ;;  %v1319_v42 = vld [vmem:[#allocation3 + $0x6c] sm:$0xf] }
  0x18   :  { %v1102_v43 = vld [vmem:[#allocation3 + $0x78] sm:$0xf0]  ;;  %v1076_v44 = vld [vmem:[#allocation3 + $0x40] sm:$0xf]  ;;  %v1316_v45 = vld [vmem:[#allocation3 + $0x4c] sm:$0xf0]  ;;  %v1101_v46 = vor.u32 %v1321_v39, %v1100_v38 }
  0x19   :  { %276 = vmatpush.bf16.msra.mxu0 %v1125_v23  ;;  %1372 = vmatpush.bf16.msra.mxu1 %v1125_v23  ;;  %v1084_v47 = vld [vmem:[#allocation3 + $0x48] sm:$0xf]  ;;  %v1317_v48 = vld [vmem:[#allocation3 + $0x54] sm:$0xf0]  ;;  %v1105_v49 = vor.u32 %v1319_v42, %v1102_v43  ;;  %v1077_v50 = vor.u32 %v1316_v45, %v1076_v44  ;;  %v1315_v51 = vld [vmem:[#allocation3 + $0x4c] sm:$0xf] }
  0x1a   :  { %v1086_v52 = vld [vmem:[#allocation3 + $0x58] sm:$0xf0]  ;;  %v1060_v53 = vld [vmem:[#allocation3 + $0x20] sm:$0xf]  ;;  %v1312_v54 = vld [vmem:[#allocation3 + $0x2c] sm:$0xf0]  ;;  %v1085_v55 = vor.u32 %v1317_v48, %v1084_v47 }
  0x1b   :  { %334 = vmatpush.bf16.msra.mxu2 %v1133_v28  ;;  %363 = vmatpush.bf16.msra.mxu3 %v1137_v31  ;;  %v1068_v56 = vld [vmem:[#allocation3 + $0x28] sm:$0xf]  ;;  %v1313_v57 = vld [vmem:[#allocation3 + $0x34] sm:$0xf0]  ;;  %v1089_v58 = vor.u32 %v1315_v51, %v1086_v52  ;;  %v1311_v59 = vld [vmem:[#allocation3 + $0x2c] sm:$0xf]  ;;  %v1061_v60 = vor.u32 %v1312_v54, %v1060_v53 }
  0x1c   :  { %v1070_v61 = vld [vmem:[#allocation3 + $0x38] sm:$0xf0]  ;;  %v1044_v62 = vld [vmem:[#allocation3] sm:$0xf]  ;;  %v1308_v63 = vld [vmem:[#allocation3 + $0xc] sm:$0xf0]  ;;  %v1069_v0 = vor.u32 %v1313_v57, %v1068_v56 }
  0x1d   :  { %277 = vmatpush.bf16.msra.mxu0 %v1109_v32  ;;  %1373 = vmatpush.bf16.msra.mxu1 %v1109_v32  ;;  %v1334_v1 = vld [vmem:[#allocation3 + $0xe4] sm:$0xf]  ;;  %v1158_v2 = vld [vmem:[#allocation3 + $0xf0] sm:$0xf0]  ;;  %v1052_v3 = vld [vmem:[#allocation3 + $0x8] sm:$0xf]  ;;  %v1073_v6 = vor.u32 %v1311_v59, %v1070_v61  ;;  %v1045_v7 = vor.u32 %v1308_v63, %v1044_v62 }
  0x1e   :  { %v1309_v4 = vld [vmem:[#allocation3 + $0x14] sm:$0xf0]  ;;  %v60_v5 = vld [vmem:[%s1710_s0] sm:$0xff]  ;;  %v61_v8 = vld [vmem:[%s1710_s0 + $0x8] sm:$0xff]  ;;  %v1161_v11 = vor.u32 %v1334_v1, %v1158_v2 }
  0x1f   :  { %335 = vmatpush.bf16.msra.mxu2 %v1117_v37  ;;  %364 = vmatpush.bf16.msra.mxu3 %v1121_v40  ;;  %v64_v9 = vld [vmem:[%s1710_s0 + $0x20] sm:$0xff]  ;;  %v65_v10 = vld [vmem:[%s1710_s0 + $0x28] sm:$0xff]  ;;  %v1053_v12 = vor.u32 %v1309_v4, %v1052_v3  ;;  %v1142_v16 = vld [vmem:[#allocation3 + $0xd0] sm:$0xf0]  ;;  %v68_v17 = vpack.c.bf16 %v61_v8, %v60_v5 }
  0x20   :  { %v1307_v13 = vld [vmem:[#allocation3 + $0xc] sm:$0xf]  ;;  %v1054_v14 = vld [vmem:[#allocation3 + $0x18] sm:$0xf0]  ;;  %v1330_v15 = vld [vmem:[#allocation3 + $0xc4] sm:$0xf]  ;;  %v1553_v18 = vpack.c.bf16 %v65_v10, %v64_v9 }
  0x21   :  { %278 = vmatpush.bf16.msra.mxu0 %v1093_v41  ;;  %1374 = vmatpush.bf16.msra.mxu1 %v1093_v41  ;;  %v1057_v19 = vor.u32 %v1307_v13, %v1054_v14  ;;  %v1145_v20 = vor.u32 %v1330_v15, %v1142_v16  ;;  %v1326_v21 = vld [vmem:[#allocation3 + $0xa4] sm:$0xf]  ;;  %v1126_v22 = vld [vmem:[#allocation3 + $0xb0] sm:$0xf0]  ;;  %v1361_v45 = vld [vmem:[#allocation5 + $0xb8] sm:$0xff] }
  0x22   :  { %v1129_v23 = vor.u32 %v1326_v21, %v1126_v22  ;;  %v1322_v24 = vld [vmem:[#allocation3 + $0x84] sm:$0xf]  ;;  %v1110_v25 = vld [vmem:[#allocation3 + $0x90] sm:$0xf0]  ;;  %v1353_v47 = vld [vmem:[#allocation5 + $0x78] sm:$0xff] }
  0x23   :  { %336 = vmatpush.bf16.msra.mxu2 %v1101_v46  ;;  %365 = vmatpush.bf16.msra.mxu3 %v1105_v49  ;;  %v1113_v26 = vor.u32 %v1322_v24, %v1110_v25  ;;  %v1318_v27 = vld [vmem:[#allocation3 + $0x64] sm:$0xf]  ;;  %v1094_v28 = vld [vmem:[#allocation3 + $0x70] sm:$0xf0]  ;;  %v1369_v46 = vld [vmem:[#allocation5 + $0xf8] sm:$0xff] }
  0x24   :  { %v62_v29 = vld [vmem:[%s1710_s0 + $0x10] sm:$0xff]  ;;  %v63_v30 = vld [vmem:[%s1710_s0 + $0x18] sm:$0xff]  ;;  %v1097_v33 = vor.u32 %v1318_v27, %v1094_v28  ;;  %v1314_v34 = vld [vmem:[#allocation3 + $0x44] sm:$0xf] }
  0x25   :  { %279 = vmatpush.bf16.msra.mxu0 %v1077_v50  ;;  %1375 = vmatpush.bf16.msra.mxu1 %v1077_v50  ;;  %v66_v31 = vld [vmem:[%s1710_s0 + $0x30] sm:$0xff]  ;;  %v67_v32 = vld [vmem:[%s1710_s0 + $0x38] sm:$0xff]  ;;  %v69_v36 = vpack.c.bf16 %v63_v30, %v62_v29  ;;  %v1310_v39 = vld [vmem:[#allocation3 + $0x24] sm:$0xf] }
  0x26   :  { %v1078_v35 = vld [vmem:[#allocation3 + $0x50] sm:$0xf0]  ;;  %v71_v37 = vpack.c.bf16 %v67_v32, %v66_v31  ;;  %v1306_v42 = vld [vmem:[#allocation3 + $0x4] sm:$0xf]  ;;  %v1345_v48 = vld [vmem:[#allocation5 + $0x38] sm:$0xff] }
  0x27   :  { %337 = vmatpush.bf16.msra.mxu2 %v1085_v55  ;;  %366 = vmatpush.bf16.msra.mxu3 %v1089_v58  ;;  %v1081_v38 = vor.u32 %v1314_v34, %v1078_v35  ;;  %v1062_v40 = vld [vmem:[#allocation3 + $0x30] sm:$0xf0]  ;;  %v1359_v53 = vld [vmem:[#allocation5 + $0xa8] sm:$0xff]  ;;  %v1342_v57 = vld [vmem:[#allocation5 + $0x20] sm:$0xff] }
  0x28   :  { %v1065_v41 = vor.u32 %v1310_v39, %v1062_v40  ;;  %v1046_v43 = vld [vmem:[#allocation3 + $0x10] sm:$0xf0]  ;;  %v1367_v54 = vld [vmem:[#allocation5 + $0xe8] sm:$0xff]  ;;  %v1341_v58 = vld [vmem:[#allocation5 + $0x18] sm:$0xff] }
  0x29   :  { %280 = vmatpush.bf16.msra.mxu0 %v1061_v60  ;;  %1376 = vmatpush.bf16.msra.mxu1 %v1061_v60  ;;  %v1049_v44 = vor.u32 %v1306_v42, %v1046_v43  ;;  %v1360_v49 = vld [vmem:[#allocation5 + $0xb0] sm:$0xff]  ;;  %v1343_v55 = vld [vmem:[#allocation5 + $0x28] sm:$0xff]  ;;  %v1358_v60 = vld [vmem:[#allocation5 + $0xa0] sm:$0xff] }
  0x2a   :  { %v1368_v50 = vld [vmem:[#allocation5 + $0xf0] sm:$0xff]  ;;  %v1351_v56 = vld [vmem:[#allocation5 + $0x68] sm:$0xff]  ;;  %v1366_v61 = vld [vmem:[#allocation5 + $0xe0] sm:$0xff] }
  0x2b   :  { %338 = vmatpush.bf16.msra.mxu2 %v1069_v0  ;;  %367 = vmatpush.bf16.msra.mxu3 %v1073_v6  ;;  %v1344_v51 = vld [vmem:[#allocation5 + $0x30] sm:$0xff]  ;;  %v1350_v62 = vld [vmem:[#allocation5 + $0x60] sm:$0xff]  ;;  %v1339_v63 = vld [vmem:[#allocation5 + $0x8] sm:$0xff] }
  0x2c   :  { %v1352_v52 = vld [vmem:[#allocation5 + $0x70] sm:$0xff]  ;;  %v1357_v0 = vld [vmem:[#allocation5 + $0x98] sm:$0xff]  ;;  %v1338_v1 = vld [vmem:[#allocation5] sm:$0xff] }
  0x2d   :  { %281 = vmatpush.bf16.msra.mxu0 %v1045_v7  ;;  %1377 = vmatpush.bf16.msra.mxu1 %v1045_v7  ;;  %v1340_v59 = vld [vmem:[#allocation5 + $0x10] sm:$0xff]  ;;  %v1365_v2 = vld [vmem:[#allocation5 + $0xd8] sm:$0xff]  ;;  %v1355_v6 = vld [vmem:[#allocation5 + $0x88] sm:$0xff] }
  0x2e   :  { %v1356_v3 = vld [vmem:[#allocation5 + $0x90] sm:$0xff]  ;;  %v1349_v4 = vld [vmem:[#allocation5 + $0x58] sm:$0xff]  ;;  %v1363_v7 = vld [vmem:[#allocation5 + $0xc8] sm:$0xff] }
  0x2f   :  { %339 = vmatpush.bf16.msra.mxu2 %v1053_v12  ;;  %368 = vmatpush.bf16.msra.mxu3 %v1057_v19  ;;  %v1364_v5 = vld [vmem:[#allocation5 + $0xd0] sm:$0xff]  ;;  %v1354_v8 = vld [vmem:[#allocation5 + $0x80] sm:$0xff] }
  0x30   :  { %282 = vmatmul.bf16.vlgmr.msra.gmra.mxu0 %v68_v17  ;;  %292 = vmatmul.bf16.vlgmr.msra.gmra.mxu1 %v1553_v18  ;;  %v1348_v9 = vld [vmem:[#allocation5 + $0x50] sm:$0xff]  ;;  %v1362_v10 = vld [vmem:[#allocation5 + $0xc0] sm:$0xff] }
  0x31   :  { %303 = vmatpush.bf16.msrb.mxu1 %v1161_v11  ;;  %698 = vmatpush.bf16.msrb.mxu0 %v1345_v48  ;;  %v1347_v11 = vld [vmem:[#allocation5 + $0x48] sm:$0xff]  ;;  %v104_v12 = vld [vmem:[%s1712_s2] sm:$0xf] }
  0x32   :  { %340 = vmatmul.bf16.vlgmr.msra.gmra.mxu2 %v68_v17  ;;  %369 = vmatmul.bf16.vlgmr.msra.gmra.mxu3 %v68_v17  ;;  %v1574_v15 = vperm.slane %v104_v12, 0  ;;  %v1577_v21 = vperm.slane %v104_v12, 2 }
  0x33   :  { %756 = vmatpush.bf16.msrb.mxu2 %v1361_v45  ;;  %785 = vmatpush.bf16.msrb.mxu3 %v1369_v46 }
  0x35   :  { %304 = vmatpush.bf16.msrb.mxu1 %v1145_v20  ;;  %699 = vmatpush.bf16.msrb.mxu0 %v1344_v51 }
  0x37   :  { %757 = vmatpush.bf16.msrb.mxu2 %v1360_v49  ;;  %786 = vmatpush.bf16.msrb.mxu3 %v1368_v50 }
  0x39   :  { %305 = vmatpush.bf16.msrb.mxu1 %v1129_v23  ;;  %700 = vmatpush.bf16.msrb.mxu0 %v1343_v55 }
  0x3b   :  { %758 = vmatpush.bf16.msrb.mxu2 %v1359_v53  ;;  %787 = vmatpush.bf16.msrb.mxu3 %v1367_v54 }
  0x3d   :  { %306 = vmatpush.bf16.msrb.mxu1 %v1113_v26  ;;  %701 = vmatpush.bf16.msrb.mxu0 %v1342_v57  ;;  %v1580_v26 = vperm.slane %v104_v12, 3 }
  0x3f   :  { %759 = vmatpush.bf16.msrb.mxu2 %v1358_v60  ;;  %788 = vmatpush.bf16.msrb.mxu3 %v1366_v61  ;;  %v1593_v60 = vperm.slane %v104_v12, 1 }
  0x40   :  { %287 = vmatmul.bf16.gmra.mxu0 %v69_v36  ;;  %297 = vmatmul.bf16.gmra.mxu1 %v71_v37 }
  0x41   :  { %307 = vmatpush.bf16.msrb.mxu1 %v1097_v33  ;;  %702 = vmatpush.bf16.msrb.mxu0 %v1341_v58 }
  0x42   :  { %345 = vmatmul.bf16.gmra.mxu2 %v69_v36  ;;  %374 = vmatmul.bf16.gmra.mxu3 %v69_v36 }
  0x43   :  { %760 = vmatpush.bf16.msrb.mxu2 %v1357_v0  ;;  %789 = vmatpush.bf16.msrb.mxu3 %v1365_v2 }
  0x45   :  { %308 = vmatpush.bf16.msrb.mxu1 %v1081_v38  ;;  %703 = vmatpush.bf16.msrb.mxu0 %v1340_v59 }
  0x47   :  { %761 = vmatpush.bf16.msrb.mxu2 %v1356_v3  ;;  %790 = vmatpush.bf16.msrb.mxu3 %v1364_v5 }
  0x49   :  { %309 = vmatpush.bf16.msrb.mxu1 %v1065_v41  ;;  %704 = vmatpush.bf16.msrb.mxu0 %v1339_v63 }
  0x4b   :  { %762 = vmatpush.bf16.msrb.mxu2 %v1355_v6  ;;  %791 = vmatpush.bf16.msrb.mxu3 %v1363_v7 }
  0x4d   :  { %310 = vmatpush.bf16.msrb.mxu1 %v1049_v44  ;;  %705 = vmatpush.bf16.msrb.mxu0 %v1338_v1 }
  0x4f   :  { %763 = vmatpush.bf16.msrb.mxu2 %v1354_v8  ;;  %792 = vmatpush.bf16.msrb.mxu3 %v1362_v10 }
  0x50   :  { %311 = vmatmul.bf16.vlgmr.msrb.gmra.mxu1 %v68_v17  ;;  %v1346_v17 = vld [vmem:[#allocation5 + $0x40] sm:$0xff] }
  0x51   :  { %727 = vmatpush.bf16.msra.mxu1 %v1353_v47 }
  0x52   :  { %350 = vmatmul.bf16.gmra.mxu2 %v1553_v18  ;;  %379 = vmatmul.bf16.gmra.mxu3 %v1553_v18 }
  0x55   :  { %728 = vmatpush.bf16.msra.mxu1 %v1352_v52 }
  0x59   :  { %729 = vmatpush.bf16.msra.mxu1 %v1351_v56 }
  0x5d   :  { %730 = vmatpush.bf16.msra.mxu1 %v1350_v62 }
  0x60   :  { %316 = vmatmul.bf16.gmra.mxu1 %v69_v36 }
  0x61   :  { %731 = vmatpush.bf16.msra.mxu1 %v1349_v4 }
  0x62   :  { %355 = vmatmul.bf16.gmra.mxu2 %v71_v37  ;;  %384 = vmatmul.bf16.gmra.mxu3 %v71_v37 }
  0x65   :  { %732 = vmatpush.bf16.msra.mxu1 %v1348_v9 }
  0x69   :  { %733 = vmatpush.bf16.msra.mxu1 %v1347_v11 }
  0x6d   :  { %734 = vmatpush.bf16.msra.mxu1 %v1346_v17 }
  0x70   :  { %321 = vmatmul.bf16.gmra.mxu1 %v1553_v18 }
  0x80   :  { %326 = vmatmul.bf16.gmra.mxu1 %v71_v37 }
  0xad   :  { %v283_v13 = vpop.f32.mrf.mxu0  ;;  %v293_v14 = vpop.f32.mrf.mxu1 }
  0xae   :  { %v284_v16 = vadd.f32 %v283_v13, %v1574_v15  ;;  %v294_v1 = vadd.f32 %v293_v14, %v1574_v15 }
  0xb0   :  { %v390_v22 = vmax.f32 %v284_v16, 0.0  ;;  %v406_v9 = vmax.f32 %v294_v1, 0.0 }
  0xb5   :  { %v341_v18 = vpop.f32.mrf.mxu2  ;;  %v285_v19 = vpop.f32.mrf.mxu0 }
  0xb6   :  { %v295_v20 = vpop.f32.mrf.mxu1  ;;  %v286_v23 = vadd.f32 %v285_v19, %v1574_v15  ;;  %v370_v24 = vpop.f32.mrf.mxu3  ;;  %v342_v27 = vadd.f32 %v341_v18, %v1577_v21 }
  0xb7   :  { %v371_v29 = vadd.f32 %v370_v24, %v1580_v26  ;;  %v296_v63 = vadd.f32 %v295_v20, %v1574_v15 }
  0xb8   :  { %v394_v25 = vmax.f32 %v286_v23, 0.0  ;;  %v392_v31 = vmax.f32 %v342_v27, 0.0 }
  0xb9   :  { %v393_v37 = vmax.f32 %v371_v29, 0.0  ;;  %v410_v6 = vmax.f32 %v296_v63, 0.0 }
  0xba   :  { %v422_v28 = vpack.c.bf16 %v394_v25, %v390_v22 }
  0xbb   :  { %v430_v16 = vpack.c.bf16 %v410_v6, %v406_v9  ;;  %v977_v6 = vld [vmem:[%s1715_s5 + $0x58] sm:$0xff]  ;;  %v975_v9 = vld [vmem:[%s1715_s5 + $0x48] sm:$0xff] }
  0xbc   :  { %706 = vmatmul.bf16.vlgmr.msrb.gmra.mxu0 %v422_v28 }
  0xbd   :  { %v343_v30 = vpop.f32.mrf.mxu2  ;;  %v288_v32 = vpop.f32.mrf.mxu0 }
  0xbe   :  { %v1584_v33 = vpop.f32.mrf.mxu1  ;;  %v344_v34 = vadd.f32 %v343_v30, %v1577_v21  ;;  %v372_v36 = vpop.f32.mrf.mxu3  ;;  %v289_v40 = vadd.f32 %v288_v32, %v1574_v15 }
  0xbf   :  { %v373_v38 = vadd.f32 %v372_v36, %v1580_v26  ;;  %v299_v30 = vadd.f32 %v1584_v33, %v1574_v15 }
  0xc0   :  { %v396_v35 = vmax.f32 %v344_v34, 0.0  ;;  %v398_v46 = vmax.f32 %v289_v40, 0.0 }
  0xc1   :  { %v397_v41 = vmax.f32 %v373_v38, 0.0 }
  0xc2   :  { %v424_v39 = vpack.c.bf16 %v396_v35, %v392_v31 }
  0xc3   :  { %v425_v42 = vpack.c.bf16 %v397_v41, %v393_v37 }
  0xc4   :  { %764 = vmatmul.bf16.vlgmr.msrb.gmra.mxu2 %v424_v39  ;;  %v414_v39 = vmax.f32 %v299_v30, 0.0  ;;  %v966_v30 = vld [vmem:[%s1715_s5] sm:$0xff] }
  0xc5   :  { %v346_v43 = vpop.f32.mrf.mxu2  ;;  %v290_v44 = vpop.f32.mrf.mxu0  ;;  %793 = vmatmul.bf16.vlgmr.msrb.gmra.mxu3 %v425_v42 }
  0xc6   :  { %v300_v45 = vpop.f32.mrf.mxu1  ;;  %v291_v47 = vadd.f32 %v290_v44, %v1574_v15  ;;  %v375_v48 = vpop.f32.mrf.mxu3  ;;  %v347_v50 = vadd.f32 %v346_v43, %v1577_v21 }
  0xc7   :  { %v376_v52 = vadd.f32 %v375_v48, %v1580_v26  ;;  %v301_v28 = vadd.f32 %v300_v45, %v1574_v15 }
  0xc8   :  { %v402_v49 = vmax.f32 %v291_v47, 0.0  ;;  %v400_v54 = vmax.f32 %v347_v50, 0.0 }
  0xc9   :  { %v401_v59 = vmax.f32 %v376_v52, 0.0  ;;  %v418_v36 = vmax.f32 %v301_v28, 0.0 }
  0xca   :  { %v426_v51 = vpack.c.bf16 %v402_v49, %v398_v46 }
  0xcb   :  { %v434_v43 = vpack.c.bf16 %v418_v36, %v414_v39 }
  0xcc   :  { %711 = vmatmul.bf16.gmra.mxu0 %v426_v51 }
  0xcd   :  { %v348_v53 = vpop.f32.mrf.mxu2 }
  0xce   :  { %v312_v55 = vpop.f32.mrf.mxu1  ;;  %v349_v56 = vadd.f32 %v348_v53, %v1577_v21  ;;  %v377_v58 = vpop.f32.mrf.mxu3 }
  0xcf   :  { %v378_v61 = vadd.f32 %v377_v58, %v1580_v26  ;;  %v313_v2 = vadd.f32 %v312_v55, %v1593_v60 }
  0xd0   :  { %v404_v57 = vmax.f32 %v349_v56, 0.0 }
  0xd1   :  { %v405_v0 = vmax.f32 %v378_v61, 0.0  ;;  %v391_v10 = vmax.f32 %v313_v2, 0.0 }
  0xd2   :  { %v428_v62 = vpack.c.bf16 %v404_v57, %v400_v54 }
  0xd3   :  { %v429_v4 = vpack.c.bf16 %v405_v0, %v401_v59 }
  0xd4   :  { %769 = vmatmul.bf16.gmra.mxu2 %v428_v62 }
  0xd5   :  { %v351_v3 = vpop.f32.mrf.mxu2  ;;  %798 = vmatmul.bf16.gmra.mxu3 %v429_v4  ;;  %v980_v4 = vld [vmem:[%s1715_s5 + $0x70] sm:$0xff] }
  0xd6   :  { %v314_v5 = vpop.f32.mrf.mxu1  ;;  %v380_v8 = vpop.f32.mrf.mxu3  ;;  %v352_v12 = vadd.f32 %v351_v3, %v1577_v21  ;;  %v981_v3 = vld [vmem:[%s1715_s5 + $0x78] sm:$0xff] }
  0xd7   :  { %v315_v7 = vadd.f32 %v314_v5, %v1593_v60  ;;  %v381_v17 = vadd.f32 %v380_v8, %v1580_v26  ;;  %986 = vmatpush.msra.mxu0 %v981_v3  ;;  %1378 = vmatpush.msra.mxu2 %v981_v3  ;;  %v978_v5 = vld [vmem:[%s1715_s5 + $0x60] sm:$0xff] }
  0xd8   :  { %v408_v18 = vmax.f32 %v352_v12, 0.0 }
  0xd9   :  { %v395_v11 = vmax.f32 %v315_v7, 0.0  ;;  %v409_v24 = vmax.f32 %v381_v17, 0.0  ;;  %987 = vmatpush.msra.mxu0 %v980_v4  ;;  %1379 = vmatpush.msra.mxu2 %v980_v4  ;;  %v976_v7 = vld [vmem:[%s1715_s5 + $0x50] sm:$0xff]  ;;  %v971_v17 = vld [vmem:[%s1715_s5 + $0x28] sm:$0xff] }
  0xdb   :  { %v423_v13 = vpack.c.bf16 %v395_v11, %v391_v10  ;;  %v974_v10 = vld [vmem:[%s1715_s5 + $0x40] sm:$0xff]  ;;  %v973_v11 = vld [vmem:[%s1715_s5 + $0x38] sm:$0xff] }
  0xdc   :  { %716 = vmatmul.bf16.gmra.mxu0 %v430_v16 }
  0xdd   :  { %735 = vmatmul.bf16.vlgmr.msra.gmra.mxu1 %v423_v13  ;;  %v353_v14 = vpop.f32.mrf.mxu2  ;;  %v972_v13 = vld [vmem:[%s1715_s5 + $0x30] sm:$0xff] }
  0xde   :  { %v317_v19 = vpop.f32.mrf.mxu1  ;;  %v354_v20 = vadd.f32 %v353_v14, %v1577_v21  ;;  %v382_v23 = vpop.f32.mrf.mxu3 }
  0xdf   :  { %v383_v25 = vadd.f32 %v382_v23, %v1580_v26  ;;  %v318_v31 = vadd.f32 %v317_v19, %v1593_v60  ;;  %v1656_v19 = vld [vmem:[%s1714_s4] ss:$0 sm:$0xff] }
  0xe0   :  { %v412_v22 = vmax.f32 %v354_v20, 0.0  ;;  %v969_v20 = vld [vmem:[%s1715_s5 + $0x18] sm:$0xff] }
  0xe1   :  { %v413_v29 = vmax.f32 %v383_v25, 0.0  ;;  %v399_v40 = vmax.f32 %v318_v31, 0.0  ;;  %v967_v25 = vld [vmem:[%s1715_s5 + $0x8] sm:$0xff] }
  0xe2   :  { %v432_v27 = vpack.c.bf16 %v412_v22, %v408_v18  ;;  %v970_v18 = vld [vmem:[%s1715_s5 + $0x20] sm:$0xff]  ;;  %v968_v22 = vld [vmem:[%s1715_s5 + $0x10] sm:$0xff] }
  0xe3   :  { %v433_v34 = vpack.c.bf16 %v413_v29, %v409_v24 }
  0xe4   :  { %774 = vmatmul.bf16.gmra.mxu2 %v432_v27 }
  0xe5   :  { %v356_v32 = vpop.f32.mrf.mxu2  ;;  %803 = vmatmul.bf16.gmra.mxu3 %v433_v34 }
  0xe6   :  { %v319_v35 = vpop.f32.mrf.mxu1  ;;  %v385_v38 = vpop.f32.mrf.mxu3  ;;  %v357_v42 = vadd.f32 %v356_v32, %v1577_v21 }
  0xe7   :  { %v320_v37 = vadd.f32 %v319_v35, %v1593_v60  ;;  %v386_v45 = vadd.f32 %v385_v38, %v1580_v26 }
  0xe8   :  { %v416_v33 = vmax.f32 %v357_v42, 0.0 }
  0xe9   :  { %v403_v41 = vmax.f32 %v320_v37, 0.0  ;;  %v417_v50 = vmax.f32 %v386_v45, 0.0 }
  0xeb   :  { %v427_v44 = vpack.c.bf16 %v403_v41, %v399_v40 }
  0xec   :  { %721 = vmatmul.bf16.gmra.mxu0 %v434_v43 }
  0xed   :  { %740 = vmatmul.bf16.gmra.mxu1 %v427_v44  ;;  %v358_v15 = vpop.f32.mrf.mxu2 }
  0xee   :  { %v322_v46 = vpop.f32.mrf.mxu1  ;;  %v359_v47 = vadd.f32 %v358_v15, %v1577_v21  ;;  %v387_v49 = vpop.f32.mrf.mxu3 }
  0xef   :  { %v388_v51 = vadd.f32 %v387_v49, %v1580_v26  ;;  %v323_v54 = vadd.f32 %v322_v46, %v1593_v60 }
  0xf0   :  { %v420_v48 = vmax.f32 %v359_v47, 0.0 }
  0xf1   :  { %v421_v53 = vmax.f32 %v388_v51, 0.0  ;;  %v407_v58 = vmax.f32 %v323_v54, 0.0 }
  0xf2   :  { %v436_v52 = vpack.c.bf16 %v420_v48, %v416_v33 }
  0xf3   :  { %v437_v55 = vpack.c.bf16 %v421_v53, %v417_v50 }
  0xf4   :  { %779 = vmatmul.bf16.gmra.mxu2 %v436_v52 }
  0xf5   :  { %808 = vmatmul.bf16.gmra.mxu3 %v437_v55 }
  0xf6   :  { %v324_v56 = vpop.f32.mrf.mxu1 }
  0xf7   :  { %v325_v57 = vadd.f32 %v324_v56, %v1593_v60 }
  0xf9   :  { %v411_v59 = vmax.f32 %v325_v57, 0.0 }
  0xfb   :  { %v431_v61 = vpack.c.bf16 %v411_v59, %v407_v58 }
  0xfd   :  { %745 = vmatmul.bf16.gmra.mxu1 %v431_v61 }
  0xfe   :  { %v327_v21 = vpop.f32.mrf.mxu1 }
  0xff   :  { %v328_v62 = vadd.f32 %v327_v21, %v1593_v60 }
 0x101   :  { %v415_v0 = vmax.f32 %v328_v62, 0.0 }
 0x106   :  { %v329_v63 = vpop.f32.mrf.mxu1 }
 0x107   :  { %v330_v26 = vadd.f32 %v329_v63, %v1593_v60  ;;  %v979_v60 = vld [vmem:[%s1715_s5 + $0x68] sm:$0xff] }
 0x108   :  { %988 = vmatpush.msra.mxu0 %v979_v60  ;;  %1380 = vmatpush.msra.mxu2 %v979_v60 }
 0x109   :  { %v419_v1 = vmax.f32 %v330_v26, 0.0 }
 0x10a   :  { %989 = vmatpush.msra.mxu0 %v978_v5  ;;  %1381 = vmatpush.msra.mxu2 %v978_v5 }
 0x10b   :  { %v435_v2 = vpack.c.bf16 %v419_v1, %v415_v0 }
 0x10c   :  { %990 = vmatpush.msra.mxu0 %v977_v6  ;;  %1382 = vmatpush.msra.mxu2 %v977_v6 }
 0x10d   :  { %750 = vmatmul.bf16.gmra.mxu1 %v435_v2 }
 0x10e   :  { %991 = vmatpush.msra.mxu0 %v976_v7  ;;  %1383 = vmatpush.msra.mxu2 %v976_v7 }
 0x110   :  { %992 = vmatpush.msra.mxu0 %v975_v9  ;;  %1384 = vmatpush.msra.mxu2 %v975_v9 }
 0x112   :  { %993 = vmatpush.msra.mxu0 %v974_v10  ;;  %1385 = vmatpush.msra.mxu2 %v974_v10 }
 0x114   :  { %994 = vmatpush.msra.mxu0 %v973_v11  ;;  %1386 = vmatpush.msra.mxu2 %v973_v11 }
 0x116   :  { %995 = vmatpush.msra.mxu0 %v972_v13  ;;  %1387 = vmatpush.msra.mxu2 %v972_v13 }
 0x118   :  { %996 = vmatpush.msra.mxu0 %v971_v17  ;;  %1388 = vmatpush.msra.mxu2 %v971_v17 }
 0x11a   :  { %997 = vmatpush.msra.mxu0 %v970_v18  ;;  %1389 = vmatpush.msra.mxu2 %v970_v18 }
 0x11c   :  { %998 = vmatpush.msra.mxu0 %v969_v20  ;;  %1390 = vmatpush.msra.mxu2 %v969_v20 }
 0x11e   :  { %999 = vmatpush.msra.mxu0 %v968_v22  ;;  %1391 = vmatpush.msra.mxu2 %v968_v22 }
 0x120   :  { %1000 = vmatpush.msra.mxu0 %v967_v25  ;;  %1392 = vmatpush.msra.mxu2 %v967_v25 }
 0x122   :  { %1001 = vmatpush.msra.mxu0 %v966_v30  ;;  %1393 = vmatpush.msra.mxu2 %v966_v30 }
 0x139   :  { %v707_v8 = vpop.f32.mrf.mxu0 }
 0x13a   :  { %v708_v24 = vadd.f32 %v1656_v19, %v707_v8 }
 0x141   :  { %v709_v14 = vpop.f32.mrf.mxu0 }
 0x142   :  { %v710_v35 = vadd.f32 %v1656_v19, %v709_v14 }
 0x147   :  { %v765_v12 = vpop.f32.mrf.mxu2 }
 0x148   :  { %v794_v16 = vpop.f32.mrf.mxu3 }
 0x149   :  { %v712_v31 = vpop.f32.mrf.mxu0 }
 0x14a   :  { %v713_v45 = vadd.f32 %v1656_v19, %v712_v31 }
 0x14f   :  { %v767_v23 = vpop.f32.mrf.mxu2 }
 0x150   :  { %v796_v27 = vpop.f32.mrf.mxu3 }
 0x151   :  { %v714_v42 = vpop.f32.mrf.mxu0 }
 0x152   :  { %v715_v54 = vadd.f32 %v1656_v19, %v714_v42 }
 0x157   :  { %v770_v37 = vpop.f32.mrf.mxu2 }
 0x158   :  { %v799_v40 = vpop.f32.mrf.mxu3 }
 0x159   :  { %v717_v52 = vpop.f32.mrf.mxu0 }
 0x15a   :  { %v736_v28 = vpop.f32.mrf.mxu1  ;;  %v718_v60 = vadd.f32 %v1656_v19, %v717_v52 }
 0x15b   :  { %v737_v29 = vadd.f32 %v736_v28, %v708_v24 }
 0x15d   :  { %v766_v32 = vadd.f32 %v765_v12, %v737_v29 }
 0x15f   :  { %v795_v34 = vadd.f32 %v794_v16, %v766_v32  ;;  %v772_v48 = vpop.f32.mrf.mxu2 }
 0x160   :  { %v801_v50 = vpop.f32.mrf.mxu3 }
 0x161   :  { %v1298_v36 = vmul.f32 -1.442695, %v795_v34  ;;  %v719_v8 = vpop.f32.mrf.mxu0 }
 0x162   :  { %v738_v38 = vpop.f32.mrf.mxu1  ;;  %v720_v28 = vadd.f32 %v1656_v19, %v719_v8 }
 0x163   :  { %1402 = vpow2.f32 %v1298_v36  ;;  %v739_v39 = vadd.f32 %v738_v38, %v710_v35 }
 0x165   :  { %v768_v41 = vadd.f32 %v767_v23, %v739_v39 }
 0x167   :  { %v797_v43 = vadd.f32 %v796_v27, %v768_v41  ;;  %v775_v63 = vpop.f32.mrf.mxu2 }
 0x168   :  { %v804_v3 = vpop.f32.mrf.mxu3 }
 0x169   :  { %v1403_v44 = vpop.eup %1402  ;;  %v1299_v15 = vmul.f32 -1.442695, %v797_v43 }
 0x16a   :  { %v838_v33 = vadd.f32 1.0, %v1403_v44  ;;  %v741_v46 = vpop.f32.mrf.mxu1 }
 0x16b   :  { %1404 = vpow2.f32 %v1299_v15  ;;  %v742_v47 = vadd.f32 %v741_v46, %v713_v45 }
 0x16c   :  { %1406 = vrcp.f32 %v838_v33  ;;  %v855_v26 = vand.u32 2147483647, %v838_v33  ;;  %v857_v0 = vand.u32 2147483648, %v838_v33  ;;  %vm851_vm1 = vweird.f32 %v838_v33 }
 0x16d   :  { %v771_v49 = vadd.f32 %v770_v37, %v742_v47 }
 0x16e   :  { %vm856_vm3 = vcmp.eq.f32.partialorder %v855_v26, 8.507059e+37  ;;  %v858_v11 = vor.u32 1.1754944e-38, %v857_v0 }
 0x16f   :  { %v800_v51 = vadd.f32 %v799_v40, %v771_v49  ;;  %v777_v25 = vpop.f32.mrf.mxu2  ;;  %v722_v40 = vpop.f32.mrf.mxu0 }
 0x170   :  { %v806_v34 = vpop.f32.mrf.mxu3  ;;  %v723_v47 = vadd.f32 %v1656_v19, %v722_v40 }
 0x171   :  { %v1405_v53 = vpop.eup %1404  ;;  %v1300_v55 = vmul.f32 -1.442695, %v800_v51 }
 0x172   :  { %v1407_v56 = vpop.eup %1406  ;;  %v839_v57 = vadd.f32 1.0, %v1405_v53  ;;  %v743_v58 = vpop.f32.mrf.mxu1 }
 0x173   :  { %1408 = vpow2.f32 %v1300_v55  ;;  %v744_v59 = vadd.f32 %v743_v58, %v715_v54  ;;  %v847_v61 = vmul.f32 %v1407_v56, %v838_v33  ;;  %vm852_vm0 = vweird.f32 %v1407_v56 }
 0x174   :  { %1410 = vrcp.f32 %v839_v57  ;;  %vm853_vm2 = vmor %vm851_vm1, %vm852_vm0  ;;  %v870_v20 = vand.u32 2147483647, %v839_v57  ;;  %v872_v22 = vand.u32 2147483648, %v839_v57  ;;  %vm866_vm5 = vweird.f32 %v839_v57 }
 0x175   :  { %v773_v21 = vadd.f32 %v772_v48, %v744_v59  ;;  %v848_v62 = vsub.f32 1.0, %v847_v61 }
 0x176   :  { %vm871_vm7 = vcmp.eq.f32.partialorder %v870_v20, 8.507059e+37  ;;  %v873_v36 = vor.u32 1.1754944e-38, %v872_v22 }
 0x177   :  { %v802_v1 = vadd.f32 %v801_v50, %v773_v21  ;;  %v849_v2 = vmul.f32 %v1407_v56, %v848_v62  ;;  %v780_v52 = vpop.f32.mrf.mxu2  ;;  %v724_v62 = vpop.f32.mrf.mxu0 }
 0x178   :  { %v809_v58 = vpop.f32.mrf.mxu3 }
 0x179   :  { %v1409_v4 = vpop.eup %1408  ;;  %v1301_v5 = vmul.f32 -1.442695, %v802_v1  ;;  %v850_v6 = vadd.f32 %v1407_v56, %v849_v2 }
 0x17a   :  { %v1411_v7 = vpop.eup %1410  ;;  %v840_v9 = vadd.f32 1.0, %v1409_v4  ;;  %v746_v10 = vpop.f32.mrf.mxu1 }
 0x17b   :  { %1412 = vpow2.f32 %v1301_v5  ;;  %v747_v12 = vadd.f32 %v746_v10, %v718_v60  ;;  %v854_v13 = vsel %vm853_vm2, %v1407_v56, %v850_v6  ;;  %v862_v16 = vmul.f32 %v1411_v7, %v839_v57 }
 0x17c   :  { %1414 = vrcp.f32 %v840_v9  ;;  %v859_v17 = vsel %vm856_vm3, %v858_v11, %v854_v13  ;;  %vm867_vm4 = vweird.f32 %v1411_v7  ;;  %v885_v44 = vand.u32 2147483647, %v840_v9 }
 0x17d   :  { %v776_v14 = vadd.f32 %v775_v63, %v747_v12  ;;  %1002 = vmatmul.f32.vlgmr.msra.gmra.mxu0 %v859_v17  ;;  %v863_v18 = vsub.f32 1.0, %v862_v16  ;;  %vm868_vm6 = vmor %vm866_vm5, %vm867_vm4  ;;  %v887_v45 = vand.u32 2147483648, %v840_v9  ;;  %vm881_vm9 = vweird.f32 %v840_v9 }
 0x17e   :  { %vm886_vm11 = vcmp.eq.f32.partialorder %v885_v44, 8.507059e+37 }
 0x17f   :  { %v805_v23 = vadd.f32 %v804_v3, %v776_v14  ;;  %v864_v24 = vmul.f32 %v1411_v7, %v863_v18  ;;  %v888_v54 = vor.u32 1.1754944e-38, %v887_v45  ;;  %v725_v3 = vadd.f32 %v1656_v19, %v724_v62  ;;  %v782_v12 = vpop.f32.mrf.mxu2  ;;  %v1401_v62 = vld [vmem:[#allocation2] ss:$0 sm:$0xff] }
 0x180   :  { %v811_v19 = vpop.f32.mrf.mxu3 }
 0x181   :  { %v1413_v27 = vpop.eup %1412  ;;  %v1302_v29 = vmul.f32 -1.442695, %v805_v23  ;;  %v865_v30 = vadd.f32 %v1411_v7, %v864_v24 }
 0x182   :  { %v1415_v31 = vpop.eup %1414  ;;  %v841_v32 = vadd.f32 1.0, %v1413_v27  ;;  %v748_v35 = vpop.f32.mrf.mxu1 }
 0x183   :  { %1416 = vpow2.f32 %v1302_v29  ;;  %v749_v37 = vadd.f32 %v748_v35, %v720_v28  ;;  %v869_v38 = vsel %vm868_vm6, %v1411_v7, %v865_v30  ;;  %v877_v39 = vmul.f32 %v1415_v31, %v840_v9 }
 0x184   :  { %1418 = vrcp.f32 %v841_v32  ;;  %v874_v41 = vsel %vm871_vm7, %v873_v36, %v869_v38  ;;  %vm882_vm8 = vweird.f32 %v1415_v31  ;;  %v900_v63 = vand.u32 2147483647, %v841_v32 }
 0x185   :  { %v778_v42 = vadd.f32 %v777_v25, %v749_v37  ;;  %1005 = vmatmul.f32.gmra.mxu0 %v874_v41  ;;  %v878_v43 = vsub.f32 1.0, %v877_v39  ;;  %vm883_vm10 = vmor %vm881_vm9, %vm882_vm8  ;;  %v902_v26 = vand.u32 2147483648, %v841_v32  ;;  %vm896_vm13 = vweird.f32 %v841_v32 }
 0x186   :  { %vm901_vm15 = vcmp.eq.f32.partialorder %v900_v63, 8.507059e+37 }
 0x187   :  { %v807_v15 = vadd.f32 %v806_v34, %v778_v42  ;;  %v879_v33 = vmul.f32 %v1415_v31, %v878_v43  ;;  %v903_v8 = vor.u32 1.1754944e-38, %v902_v26 }
 0x189   :  { %v1417_v46 = vpop.eup %1416  ;;  %v1303_v48 = vmul.f32 -1.442695, %v807_v15  ;;  %v880_v49 = vadd.f32 %v1415_v31, %v879_v33 }
 0x18a   :  { %v1419_v50 = vpop.eup %1418  ;;  %v842_v51 = vadd.f32 1.0, %v1417_v46  ;;  %v751_v53 = vpop.f32.mrf.mxu1 }
 0x18b   :  { %1420 = vpow2.f32 %v1303_v48  ;;  %v752_v55 = vadd.f32 %v751_v53, %v723_v47  ;;  %v884_v56 = vsel %vm883_vm10, %v1415_v31, %v880_v49  ;;  %v892_v57 = vmul.f32 %v1419_v50, %v841_v32 }
 0x18c   :  { %1422 = vrcp.f32 %v842_v51  ;;  %v889_v59 = vsel %vm886_vm11, %v888_v54, %v884_v56  ;;  %vm897_vm12 = vweird.f32 %v1419_v50  ;;  %v917_v14 = vand.u32 2147483648, %v842_v51 }
 0x18d   :  { %v781_v61 = vadd.f32 %v780_v52, %v752_v55  ;;  %1008 = vmatmul.f32.gmra.mxu0 %v889_v59  ;;  %v893_v21 = vsub.f32 1.0, %v892_v57  ;;  %vm898_vm14 = vmor %vm896_vm13, %vm897_vm12  ;;  %v915_v22 = vand.u32 2147483647, %v842_v51  ;;  %vm911_vm1 = vweird.f32 %v842_v51 }
 0x18e   :  { %v918_v29 = vor.u32 1.1754944e-38, %v917_v14 }
 0x18f   :  { %v810_v0 = vadd.f32 %v809_v58, %v781_v61  ;;  %v894_v1 = vmul.f32 %v1419_v50, %v893_v21  ;;  %vm916_vm3 = vcmp.eq.f32.partialorder %v915_v22, 8.507059e+37 }
 0x191   :  { %v1421_v2 = vpop.eup %1420  ;;  %v1304_v4 = vmul.f32 -1.442695, %v810_v0  ;;  %v895_v60 = vadd.f32 %v1419_v50, %v894_v1 }
 0x192   :  { %v1423_v5 = vpop.eup %1422  ;;  %v843_v6 = vadd.f32 1.0, %v1421_v2  ;;  %v753_v7 = vpop.f32.mrf.mxu1 }
 0x193   :  { %1424 = vpow2.f32 %v1304_v4  ;;  %v754_v9 = vadd.f32 %v753_v7, %v725_v3  ;;  %v899_v10 = vsel %vm898_vm14, %v1419_v50, %v895_v60  ;;  %v907_v11 = vmul.f32 %v1423_v5, %v842_v51 }
 0x194   :  { %1426 = vrcp.f32 %v843_v6  ;;  %v904_v13 = vsel %vm901_vm15, %v903_v8, %v899_v10  ;;  %vm912_vm0 = vweird.f32 %v1423_v5  ;;  %v932_v35 = vand.u32 2147483648, %v843_v6 }
 0x195   :  { %v783_v16 = vadd.f32 %v782_v12, %v754_v9  ;;  %1011 = vmatmul.f32.gmra.mxu0 %v904_v13  ;;  %v908_v17 = vsub.f32 1.0, %v907_v11  ;;  %vm913_vm2 = vmor %vm911_vm1, %vm912_vm0  ;;  %v930_v37 = vand.u32 2147483647, %v843_v6  ;;  %vm926_vm5 = vweird.f32 %v843_v6 }
 0x196   :  { %v933_v42 = vor.u32 1.1754944e-38, %v932_v35  ;;  %vm1027_vm0 = vcmask 7168  }
 0x197   :  { %v812_v18 = vadd.f32 %v811_v19, %v783_v16  ;;  %v909_v20 = vmul.f32 %v1423_v5, %v908_v17  ;;  %vm931_vm7 = vcmp.eq.f32.partialorder %v930_v37, 8.507059e+37 }
 0x199   :  { %v1425_v23 = vpop.eup %1424  ;;  %v1305_v24 = vmul.f32 -1.442695, %v812_v18  ;;  %v910_v25 = vadd.f32 %v1423_v5, %v909_v20 }
 0x19a   :  { %v1427_v27 = vpop.eup %1426  ;;  %v844_v28 = vadd.f32 1.0, %v1425_v23 }
 0x19b   :  { %1428 = vpow2.f32 %v1305_v24  ;;  %v914_v30 = vsel %vm913_vm2, %v1423_v5, %v910_v25  ;;  %v922_v31 = vmul.f32 %v1427_v27, %v843_v6  ;;  %vm927_vm4 = vweird.f32 %v1427_v27 }
 0x19c   :  { %1430 = vrcp.f32 %v844_v28  ;;  %v919_v32 = vsel %vm916_vm3, %v918_v29, %v914_v30  ;;  %vm928_vm6 = vmor %vm926_vm5, %vm927_vm4  ;;  %v947_v33 = vand.u32 2147483648, %v844_v28  ;;  %v945_v47 = vand.u32 2147483647, %v844_v28 }
 0x19d   :  { %1014 = vmatmul.f32.gmra.mxu0 %v919_v32  ;;  %v923_v34 = vsub.f32 1.0, %v922_v31  ;;  %vm941_vm9 = vweird.f32 %v844_v28 }
 0x19e   :  { %v948_v50 = vor.u32 1.1754944e-38, %v947_v33  ;;  %vm946_vm11 = vcmp.eq.f32.partialorder %v945_v47, 8.507059e+37 }
 0x19f   :  { %v924_v36 = vmul.f32 %v1427_v27, %v923_v34 }
 0x1a1   :  { %v1429_v38 = vpop.eup %1428  ;;  %v925_v39 = vadd.f32 %v1427_v27, %v924_v36 }
 0x1a2   :  { %v1431_v40 = vpop.eup %1430  ;;  %v845_v41 = vadd.f32 1.0, %v1429_v38 }
 0x1a3   :  { %v929_v43 = vsel %vm928_vm6, %v1427_v27, %v925_v39  ;;  %v937_v44 = vmul.f32 %v1431_v40, %v844_v28  ;;  %vm942_vm8 = vweird.f32 %v1431_v40 }
 0x1a4   :  { %1432 = vrcp.f32 %v845_v41  ;;  %v934_v45 = vsel %vm931_vm7, %v933_v42, %v929_v43  ;;  %vm943_vm10 = vmor %vm941_vm9, %vm942_vm8  ;;  %v962_v55 = vand.u32 2147483648, %v845_v41  ;;  %v960_v57 = vand.u32 2147483647, %v845_v41 }
 0x1a5   :  { %1017 = vmatmul.f32.gmra.mxu0 %v934_v45  ;;  %v938_v15 = vsub.f32 1.0, %v937_v44  ;;  %vm956_vm13 = vweird.f32 %v845_v41 }
 0x1a6   :  { %v963_v59 = vor.u32 1.1754944e-38, %v962_v55  ;;  %vm961_vm15 = vcmp.eq.f32.partialorder %v960_v57, 8.507059e+37 }
 0x1a7   :  { %v939_v46 = vmul.f32 %v1431_v40, %v938_v15 }
 0x1a9   :  { %v940_v48 = vadd.f32 %v1431_v40, %v939_v46 }
 0x1aa   :  { %v1433_v49 = vpop.eup %1432 }
 0x1ab   :  { %v944_v51 = vsel %vm943_vm10, %v1431_v40, %v940_v48  ;;  %v952_v52 = vmul.f32 %v1433_v49, %v845_v41  ;;  %vm957_vm12 = vweird.f32 %v1433_v49 }
 0x1ac   :  { %v949_v53 = vsel %vm946_vm11, %v948_v50, %v944_v51  ;;  %vm958_vm14 = vmor %vm956_vm13, %vm957_vm12 }
 0x1ad   :  { %1020 = vmatmul.f32.vlgmr.msra.gmra.mxu2 %v949_v53  ;;  %v953_v54 = vsub.f32 1.0, %v952_v52 }
 0x1af   :  { %v954_v56 = vmul.f32 %v1433_v49, %v953_v54 }
 0x1b1   :  { %v955_v58 = vadd.f32 %v1433_v49, %v954_v56 }
 0x1b3   :  { %v959_v61 = vsel %vm958_vm14, %v1433_v49, %v955_v58 }
 0x1b4   :  { %v964_v21 = vsel %vm961_vm15, %v963_v59, %v959_v61 }
 0x1b5   :  { %1023 = vmatmul.f32.gmra.mxu2 %v964_v21 }
 0x1fa   :  { %v1003_v63 = vpop.f32.mrf.mxu0 }
 0x1fb   :  { %v1004_v26 = vadd.f32 %v1401_v62, %v1003_v63 }
 0x1fd   :  { %1028 = vst.msk [vmem:[%s1717_s7] sm:$0xff] %vm1027_vm0, %v1004_v26 }
 0x202   :  { %v1006_v0 = vpop.f32.mrf.mxu0 }
 0x203   :  { %v1007_v1 = vadd.f32 %v1401_v62, %v1006_v0 }
 0x205   :  { %1029 = vst.msk [vmem:[%s1717_s7 + $0x8] sm:$0xff] %vm1027_vm0, %v1007_v1 }
 0x20a   :  { %v1009_v2 = vpop.f32.mrf.mxu0 }
 0x20b   :  { %v1010_v3 = vadd.f32 %v1401_v62, %v1009_v2 }
 0x20d   :  { %1030 = vst.msk [vmem:[%s1717_s7 + $0x10] sm:$0xff] %vm1027_vm0, %v1010_v3 }
 0x212   :  { %v1012_v4 = vpop.f32.mrf.mxu0 }
 0x213   :  { %v1013_v60 = vadd.f32 %v1401_v62, %v1012_v4 }
 0x215   :  { %1031 = vst.msk [vmem:[%s1717_s7 + $0x18] sm:$0xff] %vm1027_vm0, %v1013_v60 }
 0x21a   :  { %v1015_v5 = vpop.f32.mrf.mxu0 }
 0x21b   :  { %v1016_v6 = vadd.f32 %v1401_v62, %v1015_v5 }
 0x21d   :  { %1032 = vst.msk [vmem:[%s1717_s7 + $0x20] sm:$0xff] %vm1027_vm0, %v1016_v6 }
 0x222   :  { %v1018_v7 = vpop.f32.mrf.mxu0 }
 0x223   :  { %v1019_v8 = vadd.f32 %v1401_v62, %v1018_v7 }
 0x225   :  { %1033 = vst.msk [vmem:[%s1717_s7 + $0x28] sm:$0xff] %vm1027_vm0, %v1019_v8 }
 0x230   :  { %v1021_v9 = vpop.f32.mrf.mxu2 }
 0x231   :  { %v1022_v10 = vadd.f32 %v1401_v62, %v1021_v9 }
 0x233   :  { %1034 = vst.msk [vmem:[%s1717_s7 + $0x30] sm:$0xff] %vm1027_vm0, %v1022_v10 }
 0x238   :  { %v1024_v11 = vpop.f32.mrf.mxu2 }
 0x239   :  { %v1025_v12 = vadd.f32 %v1401_v62, %v1024_v11 }
 0x23b   :  { %1035 = vst.msk [vmem:[%s1717_s7 + $0x38] sm:$0xff] %vm1027_vm0, %v1025_v12 }
 0x23c   :  { %1040 = vsyncpa [#allocation4], 1 }
 0x23d   :  { %1041 = vsyncpa [#allocation6], 1 }

</bundles_post_ra>
